<compile_context>
chip_gen: v7x
topology: tpu7x:2x2x1
jax: 0.10.0
libtpu: 0.0.40
codegen_flags: <defaults>
</compile_context>

<pallas_src>
import functools

import jax
import jax.numpy as jnp
from jax.experimental import pallas as pl
from jax.experimental.pallas import tpu as pltpu

OUT_PAD = 8          # pad the 2 output columns to 8 for the MXU / layout; padded cols are zero
TILE_M = 1024        # batch tile for the grid (large-B) path
MIN_GRID_BATCH = 512 # B >= this routes to the grid path (>= 2 parallel tiles)


def _round_up(x, m):
    return ((x + m - 1) // m) * m


def _head_kernel(x_ref, w_ref, b_ref, o_ref, *, apply_softmax, out_dim):
    # MXU matmul with f32 accumulation; bias + ReLU (+ fused 2-way softmax)
    # on the VPU/EUP.  Epilogue stays f32 (required on v5e: no bf16 VPU/EUP).
    acc = jnp.dot(x_ref[...], w_ref[...], preferred_element_type=jnp.float32)
    acc = jnp.maximum(acc + b_ref[...], 0.0)            # (M, OUT_PAD)
    if apply_softmax:
        # Padded columns (weight/bias == 0) would contribute exp(0)=1, so mask
        # them to -inf before the softmax over the real `out_dim` classes.
        col = jax.lax.broadcasted_iota(jnp.int32, acc.shape, 1)
        masked = jnp.where(col < out_dim, acc, -jnp.inf)
        m = jnp.max(masked, axis=-1, keepdims=True)
        e = jnp.exp(masked - m)
        acc = e / jnp.sum(e, axis=-1, keepdims=True)
    # Fused column slice: write only the real output width (narrow masked
    # store; store slot / writeback are nowhere near the bottleneck).
    o_ref[...] = acc[:, :o_ref.shape[-1]].astype(o_ref.dtype)


def prepare_params(weight, bias, out_pad=OUT_PAD):
    """One-time parameter prep (init time, NOT per forward call).

    weight: (out_dim, N) in PyTorch nn.Linear layout; bias: (out_dim,).
    Returns weight transposed + zero-padded to (N, out_pad) and bias as
    (1, out_pad).  out_pad=8 keeps the per-call weight DMA at ~24 KiB.
    """
    out_dim, n = weight.shape
    w_prep = jnp.zeros((n, out_pad), jnp.float32).at[:, :out_dim].set(
        weight.T.astype(jnp.float32))
    b_prep = jnp.zeros((1, out_pad), jnp.float32).at[0, :out_dim].set(
        bias.astype(jnp.float32))
    return w_prep, b_prep


def binary_head_forward(x, w_prep, b_prep, *, out_dim=2, apply_softmax=True,
                        tile_m=TILE_M, min_grid_batch=MIN_GRID_BATCH):
    """softmax(relu(x @ W.T + b)) (Net's head output) for nn.Linear(N, out_dim).

    apply_softmax=False gives the raw BinaryClassification output
    relu(x @ W.T + b).  x: (B, N) float32.
    """
    B, N = x.shape
    out_pad = w_prep.shape[1]
    kern = functools.partial(_head_kernel, apply_softmax=apply_softmax,
                             out_dim=out_dim)
    out_shape = jax.ShapeDtypeStruct((B, out_dim), jnp.float32)

    if B < min_grid_batch:
        # Latency path: whole problem lives in VMEM; no grid, no pipeline
        # machinery, just launch + one DMA set + a handful of bundles.
        return pl.pallas_call(
            kern,
            out_shape=out_shape,
            in_specs=[
                pl.BlockSpec(memory_space=pltpu.MemorySpace.VMEM),
                pl.BlockSpec(memory_space=pltpu.MemorySpace.VMEM),
                pl.BlockSpec(memory_space=pltpu.MemorySpace.VMEM),
            ],
            out_specs=pl.BlockSpec(memory_space=pltpu.MemorySpace.VMEM),
        )(x, w_prep, b_prep)

    # Throughput path: tile the rows.  Always use >= 2 tiles so the v7x
    # megacore can shard the batch axis across both TensorCores (a no-op on
    # v5e/v6e).  Weight/bias BlockSpecs return block (0, 0) so they stay
    # resident across the grid.  VMEM at tm=1024: 2 x 1024x769x4 B (x double
    # buffer) + 2 x 1024x8x4 B (out) + 24 KiB (W) ~ 6.1 MiB -- fits every
    # generation's default scoped-VMEM, so no vmem_limit_bytes needed.
    tm = min(tile_m, _round_up((B + 1) // 2, 8))
    grid = (pl.cdiv(B, tm),)
    return pl.pallas_call(
        kern,
        out_shape=out_shape,
        grid=grid,
        in_specs=[
            pl.BlockSpec((tm, N), lambda i: (i, 0)),
            pl.BlockSpec((N, out_pad), lambda i: (0, 0)),
            pl.BlockSpec((1, out_pad), lambda i: (0, 0)),
        ],
        out_specs=pl.BlockSpec((tm, out_dim), lambda i: (i, 0)),
        compiler_params=pltpu.CompilerParams(
            dimension_semantics=("parallel",)),
    )(x, w_prep, b_prep)


if __name__ == "__main__":
    key = jax.random.PRNGKey(0)
    kx, kw, kb, kx2 = jax.random.split(key, 4)

    # Shapes implied by Net: the binary head consumes (B, 769) features.
    B, N, OUT = 8, 769, 2
    x = jax.random.normal(kx, (B, N), dtype=jnp.float32)

    # nn.Linear(769, 2)-shaped params, PyTorch-style uniform init.
    bound = 1.0 / jnp.sqrt(jnp.float32(N))
    weight = jax.random.uniform(kw, (OUT, N), jnp.float32, -bound, bound)
    bias = jax.random.uniform(kb, (OUT,), jnp.float32, -bound, bound)

    # One-time parameter prep (transpose + 8-lane padding) -- not per call.
    w_prep, b_prep = prepare_params(weight, bias)

    def ref_head(xx, softmax):
        pre = jnp.maximum(xx @ weight.T + bias, 0.0)
        return jax.nn.softmax(pre, axis=-1) if softmax else pre

    # Small-batch (no-grid) path, fused softmax (what Net.forward returns).
    out = jax.block_until_ready(binary_head_forward(x, w_prep, b_prep))
    assert out.shape == (B, OUT)
    assert jnp.allclose(out, ref_head(x, True), atol=1e-3, rtol=1e-3)

    # Same path, pre-softmax head (BinaryClassification.forward itself).
    out_pre = jax.block_until_ready(
        binary_head_forward(x, w_prep, b_prep, apply_softmax=False))
    assert out_pre.shape == (B, OUT)
    assert jnp.allclose(out_pre, ref_head(x, False), atol=1e-3, rtol=1e-3)

    # Grid path: B=600 -> 2 parallel tiles of 304 rows, last tile unaligned
    # (296 valid rows) to exercise the boundary-masked tile.
    B2 = 600
    x2 = jax.random.normal(kx2, (B2, N), dtype=jnp.float32)
    out2 = jax.block_until_ready(binary_head_forward(x2, w_prep, b_prep))
    assert out2.shape == (B2, OUT)
    assert jnp.allclose(out2, ref_head(x2, True), atol=1e-3, rtol=1e-3)

    print("KERNEL_OK")
</pallas_src>

<mosaic_0001>
module attributes {stable_mosaic.version = 11 : i64} {
  func.func @_head_kernel(%arg0: memref<8x769xf32, #tpu.memory_space<vmem>>, %arg1: memref<769x8xf32, #tpu.memory_space<vmem>>, %arg2: memref<1x8xf32, #tpu.memory_space<vmem>>, %arg3: memref<8x2xf32, #tpu.memory_space<vmem>>) attributes {dimension_semantics = [], scalar_prefetch = 0 : i64, scratch_operands = 0 : i64, tpu.core_type = #tpu.core_type<tc>} {
    %c0 = arith.constant 0 : index
    %c0_0 = arith.constant 0 : index
    %0 = vector.load %arg0[%c0, %c0_0] : memref<8x769xf32, #tpu.memory_space<vmem>>, vector<8x769xf32>
    %c0_1 = arith.constant 0 : index
    %c0_2 = arith.constant 0 : index
    %1 = vector.load %arg1[%c0_1, %c0_2] : memref<769x8xf32, #tpu.memory_space<vmem>>, vector<769x8xf32>
    %cst = arith.constant dense<0.000000e+00> : vector<8x8xf32>
    %2 = tpu.matmul %0, %1, %cst {dimension_numbers = #tpu.dot_dimension_numbers<[1], [0], [0], [1], [0, 0, 1, 1], [], []>} : vector<8x769xf32>, vector<769x8xf32>, vector<8x8xf32> -> vector<8x8xf32>
    %c0_3 = arith.constant 0 : index
    %c0_4 = arith.constant 0 : index
    %3 = vector.load %arg2[%c0_3, %c0_4] : memref<1x8xf32, #tpu.memory_space<vmem>>, vector<1x8xf32>
    %4 = vector.broadcast %3 : vector<1x8xf32> to vector<8x8xf32>
    %5 = arith.addf %2, %4 : vector<8x8xf32>
    %cst_5 = arith.constant 0.000000e+00 : f32
    %6 = vector.broadcast %cst_5 : f32 to vector<8x8xf32>
    %7 = arith.maximumf %5, %6 : vector<8x8xf32>
    %8 = tpu.iota {dimensions = array<i32: 1>} : vector<8x8xi32>
    %c2_i32 = arith.constant 2 : i32
    %9 = vector.broadcast %c2_i32 : i32 to vector<8x8xi32>
    %10 = arith.cmpi slt, %8, %9 : vector<8x8xi32>
    %cst_6 = arith.constant 0xFF800000 : f32
    %11 = vector.broadcast %cst_6 : f32 to vector<8x8xf32>
    %12 = arith.select %10, %7, %11 : vector<8x8xi1>, vector<8x8xf32>
    %cst_7 = arith.constant dense<0xFF800000> : vector<8xf32>
    %13 = vector.multi_reduction <maximumf>, %12, %cst_7 [1] : vector<8x8xf32> to vector<8xf32>
    %14 = vector.shape_cast %13 : vector<8xf32> to vector<8x1xf32>
    %15 = vector.broadcast %14 : vector<8x1xf32> to vector<8x8xf32>
    %16 = arith.subf %12, %15 : vector<8x8xf32>
    %17 = math.exp %16 : vector<8x8xf32>
    %cst_8 = arith.constant dense<0.000000e+00> : vector<8xf32>
    %18 = vector.multi_reduction <add>, %17, %cst_8 [1] : vector<8x8xf32> to vector<8xf32>
    %19 = vector.shape_cast %18 : vector<8xf32> to vector<8x1xf32>
    %20 = vector.broadcast %19 : vector<8x1xf32> to vector<8x8xf32>
    %21 = arith.divf %17, %20 : vector<8x8xf32>
    %22 = vector.extract_strided_slice %21 {offsets = [0, 0], sizes = [8, 2], strides = [1, 1]} : vector<8x8xf32> to vector<8x2xf32>
    %c0_9 = arith.constant 0 : index
    %c0_10 = arith.constant 0 : index
    %23 = vector.load %arg3[%c0_9, %c0_10] : memref<8x2xf32, #tpu.memory_space<vmem>>, vector<8x2xf32>
    tpu.vector_store %arg3[%c0_9, %c0_10], %22 {strides = array<i32>} : memref<8x2xf32, #tpu.memory_space<vmem>>, vector<8x2xf32>,
    return
  }
}

</mosaic_0001>

<bundles_post_ra>
// kernel: tpu_custom_call.1
= control target key start
LH: loop header
LB: loop body
LE: loop exit
PB: predicated region body
PF: predicated region fallthrough
CT: control target
= control target key end

     0   :  { %vm129_vm0 = vcmask 1040384   ;;  %vm125_vm1 = vcmask 7168   ;;  %vm654_vm2 = vmmov 0   ;;  %vm418_vm4 = vcmask 64512   ;;  %s993_s1 = inlined_call_operand.vmem [shape: f32[769,8], index: 1, kind: input, shape index: {}]   ;;  %s994_s0 = inlined_call_operand.vmem [shape: f32[8,769], index: 0, kind: input, shape index: {}]   ;;  %s995_s2 = inlined_call_operand.vmem [shape: f32[1,8], index: 2, kind: input, shape index: {}]   ;;  %s996_s3 = inlined_call_operand.vmem [shape: f32[8,2], index: 3, kind: output, shape index: {}]  }
   0x1   :  { %v37_v0 = vld [vmem:[%s993_s1 + $0x80] sm:$0xff]  ;;  %v38_v1 = vld [vmem:[%s993_s1 + $0x88] sm:$0xff]  ;;  %v39_v11 = vld [vmem:[%s993_s1 + $0x90] sm:$0xff]  ;;  %vm430_vm5 = vcmask 15360  }
   0x2   :  { %v21_v2 = vld [vmem:[%s993_s1] sm:$0xff]  ;;  %v551_v3 = vpack.c.bf16 %v38_v1, %v37_v0  ;;  %v22_v4 = vld [vmem:[%s993_s1 + $0x8] sm:$0xff]  ;;  %v40_v13 = vld [vmem:[%s993_s1 + $0x98] sm:$0xff] }
   0x3   :  { %v69_v5 = vld [vmem:[%s993_s1 + $0x180] sm:$0xff]  ;;  %v70_v6 = vld [vmem:[%s993_s1 + $0x188] sm:$0xff]  ;;  %v553_v7 = vpack.c.bf16 %v22_v4, %v21_v2  ;;  %v23_v14 = vld [vmem:[%s993_s1 + $0x10] sm:$0xff]  ;;  %v555_v16 = vpack.c.bf16 %v40_v13, %v39_v11 }
   0x4   :  { %v583_v8 = vpack.c.bf16 %v70_v6, %v69_v5  ;;  %v53_v9 = vld [vmem:[%s993_s1 + $0x100] sm:$0xff]  ;;  %v54_v10 = vld [vmem:[%s993_s1 + $0x108] sm:$0xff]  ;;  %552 = vmatprep.subr.bf16.mxu0 %v551_v3  ;;  %v24_v15 = vld [vmem:[%s993_s1 + $0x18] sm:$0xff] }
   0x5   :  { %v585_v12 = vpack.c.bf16 %v54_v10, %v53_v9  ;;  %554 = vmatpush3.bf16.msra.mxu0 %v553_v7  ;;  %v557_v17 = vpack.c.bf16 %v24_v15, %v23_v14  ;;  %v71_v18 = vld [vmem:[%s993_s1 + $0x190] sm:$0xff]  ;;  %v72_v19 = vld [vmem:[%s993_s1 + $0x198] sm:$0xff]  ;;  %v41_v23 = vld [vmem:[%s993_s1 + $0xa0] sm:$0xff] }
   0x6   :  { %584 = vmatprep.subr.bf16.mxu1 %v583_v8  ;;  %v55_v20 = vld [vmem:[%s993_s1 + $0x110] sm:$0xff]  ;;  %v587_v21 = vpack.c.bf16 %v72_v19, %v71_v18  ;;  %v56_v22 = vld [vmem:[%s993_s1 + $0x118] sm:$0xff]  ;;  %v42_v24 = vld [vmem:[%s993_s1 + $0xa8] sm:$0xff]  ;;  %556 = vmatprep.subr.bf16.mxu0 %v555_v16 }
   0x7   :  { %586 = vmatpush3.bf16.msra.mxu1 %v585_v12  ;;  %v589_v25 = vpack.c.bf16 %v56_v22, %v55_v20  ;;  %v559_v26 = vpack.c.bf16 %v42_v24, %v41_v23  ;;  %v25_v27 = vld [vmem:[%s993_s1 + $0x20] sm:$0xff]  ;;  %v26_v28 = vld [vmem:[%s993_s1 + $0x28] sm:$0xff]  ;;  %v43_v35 = vld [vmem:[%s993_s1 + $0xb0] sm:$0xff] }
   0x8   :  { %v73_v29 = vld [vmem:[%s993_s1 + $0x1a0] sm:$0xff]  ;;  %588 = vmatprep.subr.bf16.mxu1 %v587_v21  ;;  %v74_v30 = vld [vmem:[%s993_s1 + $0x1a8] sm:$0xff]  ;;  %v561_v33 = vpack.c.bf16 %v26_v28, %v25_v27  ;;  %v44_v36 = vld [vmem:[%s993_s1 + $0xb8] sm:$0xff] }
   0x9   :  { %v57_v31 = vld [vmem:[%s993_s1 + $0x120] sm:$0xff]  ;;  %v58_v32 = vld [vmem:[%s993_s1 + $0x128] sm:$0xff]  ;;  %558 = vmatpush3.bf16.msra.mxu0 %v557_v17  ;;  %v591_v34 = vpack.c.bf16 %v74_v30, %v73_v29  ;;  %v27_v37 = vld [vmem:[%s993_s1 + $0x30] sm:$0xff]  ;;  %v563_v39 = vpack.c.bf16 %v44_v36, %v43_v35 }
   0xa   :  { %560 = vmatprep.subr.bf16.mxu0 %v559_v26  ;;  %v593_v38 = vpack.c.bf16 %v58_v32, %v57_v31  ;;  %v28_v40 = vld [vmem:[%s993_s1 + $0x38] sm:$0xff]  ;;  %v75_v41 = vld [vmem:[%s993_s1 + $0x1b0] sm:$0xff]  ;;  %v45_v46 = vld [vmem:[%s993_s1 + $0xc0] sm:$0xff] }
   0xb   :  { %590 = vmatpush3.bf16.msra.mxu1 %v589_v25  ;;  %v76_v42 = vld [vmem:[%s993_s1 + $0x1b8] sm:$0xff]  ;;  %v59_v44 = vld [vmem:[%s993_s1 + $0x130] sm:$0xff]  ;;  %v46_v47 = vld [vmem:[%s993_s1 + $0xc8] sm:$0xff]  ;;  %v565_v48 = vpack.c.bf16 %v28_v40, %v27_v37 }
   0xc   :  { %592 = vmatprep.subr.bf16.mxu1 %v591_v34  ;;  %v595_v43 = vpack.c.bf16 %v76_v42, %v75_v41  ;;  %v60_v45 = vld [vmem:[%s993_s1 + $0x138] sm:$0xff]  ;;  %v77_v49 = vld [vmem:[%s993_s1 + $0x1c0] sm:$0xff]  ;;  %v78_v50 = vld [vmem:[%s993_s1 + $0x1c8] sm:$0xff]  ;;  %v567_v52 = vpack.c.bf16 %v46_v47, %v45_v46 }
   0xd   :  { %562 = vmatpush3.bf16.msra.mxu0 %v561_v33  ;;  %v597_v51 = vpack.c.bf16 %v60_v45, %v59_v44  ;;  %v29_v53 = vld [vmem:[%s993_s1 + $0x40] sm:$0xff]  ;;  %v30_v54 = vld [vmem:[%s993_s1 + $0x48] sm:$0xff]  ;;  %v599_v56 = vpack.c.bf16 %v78_v50, %v77_v49  ;;  %v47_v58 = vld [vmem:[%s993_s1 + $0xd0] sm:$0xff]  ;;  %v653_v50 = vmov 0.0  }
   0xe   :  { %564 = vmatprep.subr.bf16.mxu0 %v563_v39  ;;  %v61_v55 = vld [vmem:[%s993_s1 + $0x140] sm:$0xff]  ;;  %v62_v57 = vld [vmem:[%s993_s1 + $0x148] sm:$0xff]  ;;  %v48_v59 = vld [vmem:[%s993_s1 + $0xd8] sm:$0xff]  ;;  %v569_v62 = vpack.c.bf16 %v30_v54, %v29_v53 }
   0xf   :  { %594 = vmatpush3.bf16.msra.mxu1 %v593_v38  ;;  %v79_v60 = vld [vmem:[%s993_s1 + $0x1d0] sm:$0xff]  ;;  %v80_v61 = vld [vmem:[%s993_s1 + $0x1d8] sm:$0xff]  ;;  %v601_v63 = vpack.c.bf16 %v62_v57, %v61_v55  ;;  %v571_v0 = vpack.c.bf16 %v48_v59, %v47_v58  ;;  %v49_v6 = vld [vmem:[%s993_s1 + $0xe0] sm:$0xff] }
  0x10   :  { %596 = vmatprep.subr.bf16.mxu1 %v595_v43  ;;  %v31_v1 = vld [vmem:[%s993_s1 + $0x50] sm:$0xff]  ;;  %v32_v2 = vld [vmem:[%s993_s1 + $0x58] sm:$0xff]  ;;  %v603_v4 = vpack.c.bf16 %v80_v61, %v79_v60  ;;  %v50_v7 = vld [vmem:[%s993_s1 + $0xe8] sm:$0xff] }
  0x11   :  { %566 = vmatpush3.bf16.msra.mxu0 %v565_v48  ;;  %v63_v3 = vld [vmem:[%s993_s1 + $0x150] sm:$0xff]  ;;  %v64_v5 = vld [vmem:[%s993_s1 + $0x158] sm:$0xff]  ;;  %v81_v8 = vld [vmem:[%s993_s1 + $0x1e0] sm:$0xff]  ;;  %v573_v10 = vpack.c.bf16 %v32_v2, %v31_v1  ;;  %v575_v14 = vpack.c.bf16 %v50_v7, %v49_v6 }
  0x12   :  { %568 = vmatprep.subr.bf16.mxu0 %v567_v52  ;;  %v82_v9 = vld [vmem:[%s993_s1 + $0x1e8] sm:$0xff]  ;;  %v33_v11 = vld [vmem:[%s993_s1 + $0x60] sm:$0xff]  ;;  %v605_v13 = vpack.c.bf16 %v64_v5, %v63_v3  ;;  %v51_v19 = vld [vmem:[%s993_s1 + $0xf0] sm:$0xff] }
  0x13   :  { %598 = vmatpush3.bf16.msra.mxu1 %v597_v51  ;;  %v15_v12 = vld [vmem:[%s994_s0 + $0x8] sm:$0xff]  ;;  %v65_v16 = vld [vmem:[%s993_s1 + $0x160] sm:$0xff]  ;;  %v607_v18 = vpack.c.bf16 %v82_v9, %v81_v8  ;;  %v52_v20 = vld [vmem:[%s993_s1 + $0xf8] sm:$0xff] }
  0x14   :  { %600 = vmatprep.subr.bf16.mxu1 %v599_v56  ;;  %v34_v15 = vld [vmem:[%s993_s1 + $0x68] sm:$0xff]  ;;  %197 = vmatprep.mubr.f32.mxu0 %v15_v12  ;;  %v17_v21 = vld [vmem:[%s994_s0 + $0x18] sm:$0xff]  ;;  %v83_v22 = vld [vmem:[%s993_s1 + $0x1f0] sm:$0xff]  ;;  %v579_v26 = vpack.c.bf16 %v52_v20, %v51_v19 }
  0x15   :  { %570 = vmatpush3.bf16.msra.mxu0 %v569_v62  ;;  %v66_v17 = vld [vmem:[%s993_s1 + $0x168] sm:$0xff]  ;;  %v84_v23 = vld [vmem:[%s993_s1 + $0x1f8] sm:$0xff]  ;;  %267 = vmatprep.mubr.f32.mxu1 %v17_v21  ;;  %v577_v24 = vpack.c.bf16 %v34_v15, %v33_v11  ;;  %v35_v27 = vld [vmem:[%s993_s1 + $0x70] sm:$0xff] }
  0x16   :  { %572 = vmatprep.subr.bf16.mxu0 %v571_v0  ;;  %v609_v25 = vpack.c.bf16 %v66_v17, %v65_v16  ;;  %v36_v28 = vld [vmem:[%s993_s1 + $0x78] sm:$0xff]  ;;  %v67_v29 = vld [vmem:[%s993_s1 + $0x170] sm:$0xff]  ;;  %v611_v30 = vpack.c.bf16 %v84_v23, %v83_v22  ;;  %v101_v32 = vld [vmem:[%s993_s1 + $0x280] sm:$0xff] }
  0x17   :  { %602 = vmatpush3.bf16.msra.mxu1 %v601_v63  ;;  %v68_v31 = vld [vmem:[%s993_s1 + $0x178] sm:$0xff]  ;;  %v102_v33 = vld [vmem:[%s993_s1 + $0x288] sm:$0xff]  ;;  %v581_v34 = vpack.c.bf16 %v36_v28, %v35_v27  ;;  %v85_v37 = vld [vmem:[%s993_s1 + $0x200] sm:$0xff] }
  0x18   :  { %604 = vmatprep.subr.bf16.mxu1 %v603_v4  ;;  %v613_v35 = vpack.c.bf16 %v68_v31, %v67_v29  ;;  %v615_v36 = vpack.c.bf16 %v102_v33, %v101_v32  ;;  %v86_v38 = vld [vmem:[%s993_s1 + $0x208] sm:$0xff]  ;;  %v103_v39 = vld [vmem:[%s993_s1 + $0x290] sm:$0xff]  ;;  %v104_v40 = vld [vmem:[%s993_s1 + $0x298] sm:$0xff] }
  0x19   :  { %574 = vmatpush3.bf16.msra.mxu0 %v573_v10  ;;  %v14_v41 = vld [vmem:[%s994_s0] sm:$0xff]  ;;  %v617_v42 = vpack.c.bf16 %v86_v38, %v85_v37  ;;  %v16_v43 = vld [vmem:[%s994_s0 + $0x10] sm:$0xff]  ;;  %v619_v44 = vpack.c.bf16 %v104_v40, %v103_v39  ;;  %v88_v46 = vld [vmem:[%s993_s1 + $0x218] sm:$0xff] }
  0x1a   :  { %576 = vmatprep.subr.bf16.mxu0 %v575_v14  ;;  %v87_v45 = vld [vmem:[%s993_s1 + $0x210] sm:$0xff]  ;;  %v105_v47 = vld [vmem:[%s993_s1 + $0x2a0] sm:$0xff]  ;;  %v106_v48 = vld [vmem:[%s993_s1 + $0x2a8] sm:$0xff] }
  0x1b   :  { %606 = vmatpush3.bf16.msra.mxu1 %v605_v13  ;;  %v19_v49 = vld [vmem:[%s994_s0 + $0x28] sm:$0xff]  ;;  %v117_v51 = vld [vmem:[%s993_s1 + $0x300] sm:$0x1]  ;;  %v621_v52 = vpack.c.bf16 %v88_v46, %v87_v45  ;;  %v623_v53 = vpack.c.bf16 %v106_v48, %v105_v47  ;;  %v20_v56 = vld [vmem:[%s994_s0 + $0x30] sm:$0xff] }
  0x1c   :  { %608 = vmatprep.subr.bf16.mxu1 %v607_v18  ;;  %v89_v54 = vld [vmem:[%s993_s1 + $0x220] sm:$0xff]  ;;  %v90_v55 = vld [vmem:[%s993_s1 + $0x228] sm:$0xff]  ;;  %v107_v57 = vld [vmem:[%s993_s1 + $0x2b0] sm:$0xff] }
  0x1d   :  { %578 = vmatpush3.bf16.msra.mxu0 %v577_v24  ;;  %v108_v58 = vld [vmem:[%s993_s1 + $0x2b8] sm:$0xff]  ;;  %v625_v59 = vpack.c.bf16 %v90_v55, %v89_v54  ;;  %v91_v61 = vld [vmem:[%s993_s1 + $0x230] sm:$0xff]  ;;  %v109_v63 = vld [vmem:[%s993_s1 + $0x2c0] sm:$0xff] }
  0x1e   :  { %580 = vmatprep.subr.bf16.mxu0 %v579_v26  ;;  %v627_v60 = vpack.c.bf16 %v108_v58, %v107_v57  ;;  %v92_v62 = vld [vmem:[%s993_s1 + $0x238] sm:$0xff]  ;;  %v110_v0 = vld [vmem:[%s993_s1 + $0x2c8] sm:$0xff]  ;;  %v93_v3 = vld [vmem:[%s993_s1 + $0x240] sm:$0xff] }
  0x1f   :  { %610 = vmatpush3.bf16.msra.mxu1 %v609_v25  ;;  %v629_v1 = vpack.c.bf16 %v92_v62, %v91_v61  ;;  %v631_v2 = vpack.c.bf16 %v110_v0, %v109_v63  ;;  %v94_v4 = vld [vmem:[%s993_s1 + $0x248] sm:$0xff]  ;;  %v111_v5 = vld [vmem:[%s993_s1 + $0x2d0] sm:$0xff]  ;;  %v112_v6 = vld [vmem:[%s993_s1 + $0x2d8] sm:$0xff] }
  0x20   :  { %612 = vmatprep.subr.bf16.mxu1 %v611_v30  ;;  %v633_v7 = vpack.c.bf16 %v94_v4, %v93_v3  ;;  %v635_v8 = vpack.c.bf16 %v112_v6, %v111_v5  ;;  %v95_v9 = vld [vmem:[%s993_s1 + $0x250] sm:$0xff]  ;;  %v96_v10 = vld [vmem:[%s993_s1 + $0x258] sm:$0xff]  ;;  %v113_v11 = vld [vmem:[%s993_s1 + $0x2e0] sm:$0xff] }
  0x21   :  { %582 = vmatpush3.bf16.msra.mxu0 %v581_v34  ;;  %v114_v12 = vld [vmem:[%s993_s1 + $0x2e8] sm:$0xff]  ;;  %v637_v13 = vpack.c.bf16 %v96_v10, %v95_v9  ;;  %v97_v15 = vld [vmem:[%s993_s1 + $0x260] sm:$0xff]  ;;  %v115_v17 = vld [vmem:[%s993_s1 + $0x2f0] sm:$0xff] }
  0x22   :  { %616 = vmatprep.subr.bf16.mxu0 %v615_v36  ;;  %v639_v14 = vpack.c.bf16 %v114_v12, %v113_v11  ;;  %v98_v16 = vld [vmem:[%s993_s1 + $0x268] sm:$0xff]  ;;  %v116_v18 = vld [vmem:[%s993_s1 + $0x2f8] sm:$0xff]  ;;  %v99_v21 = vld [vmem:[%s993_s1 + $0x270] sm:$0xff]  ;;  %v414_v36 = vlaneseq }
  0x23   :  { %614 = vmatpush3.bf16.msra.mxu1 %v613_v35  ;;  %v641_v19 = vpack.c.bf16 %v98_v16, %v97_v15  ;;  %v643_v20 = vpack.c.bf16 %v116_v18, %v115_v17  ;;  %v100_v22 = vld [vmem:[%s993_s1 + $0x278] sm:$0xff]  ;;  %v18_v24 = vld [vmem:[%s994_s0 + $0x20] sm:$0xff] }
  0x24   :  { %546 = vmatprep.subr.mxu1 %v653_v50  ;;  %198 = vmatmul.mubr.f32.vlgmr.msra.gmra.mrb[0].mxu0 %v14_v41  ;;  %v645_v23 = vpack.c.bf16 %v100_v22, %v99_v21  ;;  %v436_v26 = vld [vmem:[%s995_s2] ss:$0 sm:$0xff]  ;;  %v415_v40 = vand.u32 127, %v414_v36 }
  0x25   :  { %618 = vmatpush3.bf16.msra.mxu0 %v617_v42  ;;  %337 = vmatprep.mubr.f32.mxu0 %v19_v49 }
  0x26   :  { %268 = vmatmul.mubr.f32.vlgmr.msra.gmra.mrb[0].mxu1 %v16_v43  ;;  %620 = vmatprep.subr.bf16.mxu0 %v619_v44  ;;  %vm416_vm3 = vcmp.lt.s32.totalorder %v415_v40, 2 }
  0x27   :  { %547 = vmatpush3.msk.msra.mxu1 %vm129_vm0, %v117_v51  ;;  %548 = vmatprep.mubr.msk.f32.mxu1 %vm654_vm2, %v653_v50 }
  0x29   :  { %622 = vmatpush3.bf16.msra.mxu0 %v621_v52 }
  0x2a   :  { %549 = vmatmul.mubr.msk.f32.vlgmr.msra.gmra.mrb[2].mxu1 %vm125_vm1, %v20_v56  ;;  %624 = vmatprep.subr.bf16.mxu0 %v623_v53 }
  0x2d   :  { %626 = vmatpush3.bf16.msra.mxu0 %v625_v59 }
  0x2e   :  { %628 = vmatprep.subr.bf16.mxu0 %v627_v60 }
  0x31   :  { %630 = vmatpush3.bf16.msra.mxu0 %v629_v1 }
  0x32   :  { %632 = vmatprep.subr.bf16.mxu0 %v631_v2 }
  0x35   :  { %634 = vmatpush3.bf16.msra.mxu0 %v633_v7 }
  0x36   :  { %636 = vmatprep.subr.bf16.mxu0 %v635_v8 }
  0x39   :  { %638 = vmatpush3.bf16.msra.mxu0 %v637_v13 }
  0x3a   :  { %640 = vmatprep.subr.bf16.mxu0 %v639_v14 }
  0x3d   :  { %642 = vmatpush3.bf16.msra.mxu0 %v641_v19 }
  0x3e   :  { %644 = vmatprep.subr.bf16.mxu0 %v643_v20 }
  0x41   :  { %646 = vmatpush3.bf16.msra.mxu0 %v645_v23 }
  0x44   :  { %338 = vmatmul.mubr.f32.vlgmr.msra.gmra.mrb[2].mxu0 %v18_v24 }
  0xf7   :  { %v471_v25 = vpop.f32.mrb[0].mxu0 }
  0xf8   :  { %v472_v27 = vpop.f32.mrb[1].mxu0 }
  0xf9   :  { %v506_v28 = vpop.f32.mrb[0].mxu1  ;;  %v473_v29 = vadd.f32 %v472_v27, %v471_v25 }
  0xfa   :  { %v507_v30 = vpop.f32.mrb[1].mxu1 }
  0xfb   :  { %v508_v31 = vadd.f32 %v507_v30, %v506_v28  ;;  %v200_v32 = vadd.f32 %v473_v29, %v436_v26 }
  0xfd   :  { %v409_v33 = vpop.f32.mrb[2].mxu1  ;;  %v270_v34 = vadd.f32 %v508_v31, %v200_v32 }
  0xfe   :  { %v550_v35 = vpop.f32.mrb[3].mxu1 }
 0x117   :  { %v541_v37 = vpop.f32.mrb[2].mxu0 }
 0x118   :  { %v542_v38 = vpop.f32.mrb[3].mxu0 }
 0x119   :  { %v543_v39 = vadd.f32 %v542_v38, %v541_v37 }
 0x11b   :  { %v340_v41 = vadd.f32 %v543_v39, %v270_v34 }
 0x11d   :  { %v410_v42 = vadd.f32 %v409_v33, %v340_v41 }
 0x11f   :  { %v413_v43 = vmax.f32 %v410_v42, 0.0 }
 0x121   :  { %v417_v44 = vsel %vm416_vm3, %v413_v43, -inf }
 0x122   :  { %v419_v45 = vsel %vm418_vm4, %v417_v44, -inf }
 0x123   :  { %420 = vmax.xlane.f32.xlu0 %v419_v45 }
 0x1b0   :  { %v421_v46 = vpop.xlane.xlu0 %420 }
 0x1b1   :  { %v422_v47 = vsub.f32 %v417_v44, %v421_v46 }
 0x1b3   :  { %v423_v48 = vmul.f32 1.442695, %v422_v47 }
 0x1b5   :  { %649 = vpow2.f32 %v423_v48 }
 0x1bf   :  { %v650_v49 = vpop.eup %649 }
 0x1c0   :  { %v425_v50 = vsel %vm418_vm4, %v650_v49, 0.0 }
 0x1c1   :  { %426 = vadd.xlane.f32.xlu0 %v425_v50 }
 0x24e   :  { %v427_v51 = vpop.xlane.xlu0 %426 }
 0x24f   :  { %651 = vrcp.f32 %v427_v51 }
 0x259   :  { %v652_v52 = vpop.eup %651 }
 0x25a   :  { %v429_v53 = vmul.f32 %v652_v52, %v650_v49 }
 0x25c   :  { %431 = vst.msk [vmem:[%s996_s3] sm:$0xff] %vm430_vm5, %v429_v53 }

</bundles_post_ra>
